<compile_context>
chip_gen: v6e
topology: v6e:2x2x1
jax: 0.10.0
libtpu: 0.0.40
codegen_flags: <defaults>
</compile_context>

<pallas_src>
import math
import jax
import jax.numpy as jnp
from jax.experimental import pallas as pl
from jax.experimental.pallas import tpu as pltpu


def _mlp_kernel(x_ref, w1_ref, b1_ref, w2_ref, b2_ref, w3_ref, b3_ref, o_ref):
    # bf16 operands into the MXU, f32 accumulation; bias-add / ReLU in f32.
    x = x_ref[...].astype(jnp.bfloat16)

    h = jnp.dot(x, w1_ref[...], preferred_element_type=jnp.float32)
    h = jnp.maximum(h + b1_ref[...], 0.0)

    h = jnp.dot(h.astype(jnp.bfloat16), w2_ref[...],
                preferred_element_type=jnp.float32)
    h = jnp.maximum(h + b2_ref[...], 0.0)

    h = jnp.dot(h.astype(jnp.bfloat16), w3_ref[...],
                preferred_element_type=jnp.float32)
    h = jnp.maximum(h + b3_ref[...], 0.0)

    o_ref[...] = h.astype(o_ref.dtype)


def shared_state_embedding_forward(state, params, *, batch_tile=256):
    """state: [B, state_dim] float32. Returns [B, 256] float32."""
    w1, b1, w2, b2, w3, b3 = params
    B, S = state.shape
    H1, H2, L = w1.shape[1], w2.shape[1], w3.shape[1]

    # bf16 weights: MXU-native on v5e/v6e/v7x and half the weight HBM traffic.
    w1b = w1.astype(jnp.bfloat16)
    w2b = w2.astype(jnp.bfloat16)
    w3b = w3.astype(jnp.bfloat16)

    # Batch tile: whole batch (rounded to a sublane multiple of 8) when small,
    # otherwise `batch_tile` rows per grid step.
    if B <= batch_tile:
        TB = max(8, -(-B // 8) * 8)
    else:
        TB = batch_tile
    padded_B = -(-B // TB) * TB
    x = state
    if padded_B != B:
        x = jnp.pad(x, ((0, padded_B - B), (0, 0)))
    grid = (padded_B // TB,)

    flops = 2 * padded_B * (S * H1 + H1 * H2 + H2 * L)
    bytes_accessed = (
        x.size * x.dtype.itemsize
        + sum(a.size * a.dtype.itemsize for a in (w1b, b1, w2b, b2, w3b, b3))
        + padded_B * L * 4
    )

    out = pl.pallas_call(
        _mlp_kernel,
        out_shape=jax.ShapeDtypeStruct((padded_B, L), jnp.float32),
        grid=grid,
        in_specs=[
            # activation tile: batch-blocked, double-buffered by the pipeline
            pl.BlockSpec((TB, S), lambda i: (i, 0)),
            # weights/biases: constant block index -> VMEM-resident, DMA'd once
            pl.BlockSpec((S, H1), lambda i: (0, 0)),
            pl.BlockSpec((1, H1), lambda i: (0, 0)),
            pl.BlockSpec((H1, H2), lambda i: (0, 0)),
            pl.BlockSpec((1, H2), lambda i: (0, 0)),
            pl.BlockSpec((H2, L), lambda i: (0, 0)),
            pl.BlockSpec((1, L), lambda i: (0, 0)),
        ],
        out_specs=pl.BlockSpec((TB, L), lambda i: (i, 0)),
        compiler_params=pltpu.CompilerParams(
            dimension_semantics=("parallel",)),
        cost_estimate=pl.CostEstimate(
            flops=flops, transcendentals=0, bytes_accessed=bytes_accessed),
    )(x, w1b, b1, w2b, b2, w3b, b3)

    return out[:B]


def init_params(key, state_dim, l1=256, l2=256, l3=256):
    """Deterministic init mimicking PyTorch nn.Linear (uniform +-1/sqrt(fan_in)).
    Weights returned as [in, out] float32; biases as [1, out] float32."""
    ks = jax.random.split(key, 6)

    def linear(kw, kb, fan_in, fan_out):
        bound = 1.0 / math.sqrt(fan_in)
        w = jax.random.uniform(kw, (fan_in, fan_out), jnp.float32, -bound, bound)
        b = jax.random.uniform(kb, (1, fan_out), jnp.float32, -bound, bound)
        return w, b

    w1, b1 = linear(ks[0], ks[1], state_dim, l1)
    w2, b2 = linear(ks[2], ks[3], l1, l2)
    w3, b3 = linear(ks[4], ks[5], l2, l3)
    return (w1, b1, w2, b2, w3, b3)


def _reference_f32(state, params):
    w1, b1, w2, b2, w3, b3 = params
    h = jnp.maximum(state @ w1 + b1, 0.0)
    h = jnp.maximum(h @ w2 + b2, 0.0)
    h = jnp.maximum(h @ w3 + b3, 0.0)
    return h


def _reference_bf16(state, params):
    """Reference with the same bf16-operand / f32-accumulate precision as the kernel."""
    w1, b1, w2, b2, w3, b3 = params
    bf = jnp.bfloat16
    h = jnp.dot(state.astype(bf), w1.astype(bf), preferred_element_type=jnp.float32)
    h = jnp.maximum(h + b1, 0.0)
    h = jnp.dot(h.astype(bf), w2.astype(bf), preferred_element_type=jnp.float32)
    h = jnp.maximum(h + b2, 0.0)
    h = jnp.dot(h.astype(bf), w3.astype(bf), preferred_element_type=jnp.float32)
    h = jnp.maximum(h + b3, 0.0)
    return h


if __name__ == "__main__":
    key = jax.random.PRNGKey(0)
    k_params, k_state1, k_state2 = jax.random.split(key, 3)

    state_dim = 16  # MetaWorld-ish low-dim observation

    params = init_params(k_params, state_dim)

    # Case 1: small batch (single grid step).
    state = jax.random.normal(k_state1, (8, state_dim), dtype=jnp.float32)
    out = jax.block_until_ready(shared_state_embedding_forward(state, params))
    assert out.shape == (8, 256)
    assert jnp.allclose(out, _reference_bf16(state, params), atol=1e-3, rtol=1e-3)
    assert jnp.allclose(out, _reference_f32(state, params), atol=5e-2, rtol=5e-2)

    # Case 2: batch not a multiple of the sublane tile (exercises padding + slice).
    state2 = jax.random.normal(k_state2, (40, state_dim), dtype=jnp.float32)
    out2 = jax.block_until_ready(shared_state_embedding_forward(state2, params))
    assert out2.shape == (40, 256)
    assert jnp.allclose(out2, _reference_bf16(state2, params), atol=1e-3, rtol=1e-3)
    assert jnp.allclose(out2, _reference_f32(state2, params), atol=5e-2, rtol=5e-2)

    print("KERNEL_OK")
</pallas_src>

<mosaic_0001>
module attributes {stable_mosaic.version = 11 : i64} {
  func.func @_mlp_kernel(%arg0: i32, %arg1: memref<8x16xf32, #tpu.memory_space<vmem>>, %arg2: memref<16x256xbf16, #tpu.memory_space<vmem>>, %arg3: memref<1x256xf32, #tpu.memory_space<vmem>>, %arg4: memref<256x256xbf16, #tpu.memory_space<vmem>>, %arg5: memref<1x256xf32, #tpu.memory_space<vmem>>, %arg6: memref<256x256xbf16, #tpu.memory_space<vmem>>, %arg7: memref<1x256xf32, #tpu.memory_space<vmem>>, %arg8: memref<8x256xf32, #tpu.memory_space<vmem>>) attributes {dimension_semantics = [#tpu.dimension_semantics<parallel>], iteration_bounds = array<i64: 1>, scalar_prefetch = 0 : i64, scratch_operands = 0 : i64, tpu.core_type = #tpu.core_type<tc>, window_params = [{transform_indices = @transform_0, window_bounds = array<i64: 8, 16>}, {pipeline_mode = #tpu.pipeline_mode<synchronous>, transform_indices = @transform_1, window_bounds = array<i64: 16, 256>}, {pipeline_mode = #tpu.pipeline_mode<synchronous>, transform_indices = @transform_2, window_bounds = array<i64: 1, 256>}, {pipeline_mode = #tpu.pipeline_mode<synchronous>, transform_indices = @transform_3, window_bounds = array<i64: 256, 256>}, {pipeline_mode = #tpu.pipeline_mode<synchronous>, transform_indices = @transform_4, window_bounds = array<i64: 1, 256>}, {pipeline_mode = #tpu.pipeline_mode<synchronous>, transform_indices = @transform_5, window_bounds = array<i64: 256, 256>}, {pipeline_mode = #tpu.pipeline_mode<synchronous>, transform_indices = @transform_6, window_bounds = array<i64: 1, 256>}, {transform_indices = @transform_7, window_bounds = array<i64: 8, 256>}]} {
    %c0 = arith.constant 0 : index
    %c0_0 = arith.constant 0 : index
    %0 = vector.load %arg1[%c0, %c0_0] : memref<8x16xf32, #tpu.memory_space<vmem>>, vector<8x16xf32>
    %1 = arith.truncf %0 : vector<8x16xf32> to vector<8x16xbf16>
    %c0_1 = arith.constant 0 : index
    %c0_2 = arith.constant 0 : index
    %2 = vector.load %arg2[%c0_1, %c0_2] : memref<16x256xbf16, #tpu.memory_space<vmem>>, vector<16x256xbf16>
    %cst = arith.constant dense<0.000000e+00> : vector<8x256xf32>
    %3 = tpu.matmul %1, %2, %cst {dimension_numbers = #tpu.dot_dimension_numbers<[1], [0], [0], [1], [0, 0, 1, 1], [], []>} : vector<8x16xbf16>, vector<16x256xbf16>, vector<8x256xf32> -> vector<8x256xf32>
    %c0_3 = arith.constant 0 : index
    %c0_4 = arith.constant 0 : index
    %4 = vector.load %arg3[%c0_3, %c0_4] : memref<1x256xf32, #tpu.memory_space<vmem>>, vector<1x256xf32>
    %5 = vector.broadcast %4 : vector<1x256xf32> to vector<8x256xf32>
    %6 = arith.addf %3, %5 : vector<8x256xf32>
    %cst_5 = arith.constant 0.000000e+00 : f32
    %7 = vector.broadcast %cst_5 : f32 to vector<8x256xf32>
    %8 = arith.maximumf %6, %7 : vector<8x256xf32>
    %9 = arith.truncf %8 : vector<8x256xf32> to vector<8x256xbf16>
    %c0_6 = arith.constant 0 : index
    %c0_7 = arith.constant 0 : index
    %10 = vector.load %arg4[%c0_6, %c0_7] : memref<256x256xbf16, #tpu.memory_space<vmem>>, vector<256x256xbf16>
    %cst_8 = arith.constant dense<0.000000e+00> : vector<8x256xf32>
    %11 = tpu.matmul %9, %10, %cst_8 {dimension_numbers = #tpu.dot_dimension_numbers<[1], [0], [0], [1], [0, 0, 1, 1], [], []>} : vector<8x256xbf16>, vector<256x256xbf16>, vector<8x256xf32> -> vector<8x256xf32>
    %c0_9 = arith.constant 0 : index
    %c0_10 = arith.constant 0 : index
    %12 = vector.load %arg5[%c0_9, %c0_10] : memref<1x256xf32, #tpu.memory_space<vmem>>, vector<1x256xf32>
    %13 = vector.broadcast %12 : vector<1x256xf32> to vector<8x256xf32>
    %14 = arith.addf %11, %13 : vector<8x256xf32>
    %cst_11 = arith.constant 0.000000e+00 : f32
    %15 = vector.broadcast %cst_11 : f32 to vector<8x256xf32>
    %16 = arith.maximumf %14, %15 : vector<8x256xf32>
    %17 = arith.truncf %16 : vector<8x256xf32> to vector<8x256xbf16>
    %c0_12 = arith.constant 0 : index
    %c0_13 = arith.constant 0 : index
    %18 = vector.load %arg6[%c0_12, %c0_13] : memref<256x256xbf16, #tpu.memory_space<vmem>>, vector<256x256xbf16>
    %cst_14 = arith.constant dense<0.000000e+00> : vector<8x256xf32>
    %19 = tpu.matmul %17, %18, %cst_14 {dimension_numbers = #tpu.dot_dimension_numbers<[1], [0], [0], [1], [0, 0, 1, 1], [], []>} : vector<8x256xbf16>, vector<256x256xbf16>, vector<8x256xf32> -> vector<8x256xf32>
    %c0_15 = arith.constant 0 : index
    %c0_16 = arith.constant 0 : index
    %20 = vector.load %arg7[%c0_15, %c0_16] : memref<1x256xf32, #tpu.memory_space<vmem>>, vector<1x256xf32>
    %21 = vector.broadcast %20 : vector<1x256xf32> to vector<8x256xf32>
    %22 = arith.addf %19, %21 : vector<8x256xf32>
    %cst_17 = arith.constant 0.000000e+00 : f32
    %23 = vector.broadcast %cst_17 : f32 to vector<8x256xf32>
    %24 = arith.maximumf %22, %23 : vector<8x256xf32>
    %c0_18 = arith.constant 0 : index
    %c0_19 = arith.constant 0 : index
    %25 = vector.load %arg8[%c0_18, %c0_19] : memref<8x256xf32, #tpu.memory_space<vmem>>, vector<8x256xf32>
    tpu.vector_store %arg8[%c0_18, %c0_19], %24 {strides = array<i32>} : memref<8x256xf32, #tpu.memory_space<vmem>>, vector<8x256xf32>,
    return
  }
  func.func @transform_0(%arg0: i32) -> (i32, i32) {
    %c0_i32 = arith.constant 0 : i32
    %c0_i32_0 = arith.constant 0 : i32
    return %arg0, %c0_i32 : i32, i32
  }
  func.func @transform_1(%arg0: i32) -> (i32, i32) {
    %c0_i32 = arith.constant 0 : i32
    %c0_i32_0 = arith.constant 0 : i32
    %c0_i32_1 = arith.constant 0 : i32
    return %c0_i32, %c0_i32_0 : i32, i32
  }
  func.func @transform_2(%arg0: i32) -> (i32, i32) {
    %c0_i32 = arith.constant 0 : i32
    %c0_i32_0 = arith.constant 0 : i32
    %c0_i32_1 = arith.constant 0 : i32
    return %c0_i32, %c0_i32_0 : i32, i32
  }
  func.func @transform_3(%arg0: i32) -> (i32, i32) {
    %c0_i32 = arith.constant 0 : i32
    %c0_i32_0 = arith.constant 0 : i32
    %c0_i32_1 = arith.constant 0 : i32
    return %c0_i32, %c0_i32_0 : i32, i32
  }
  func.func @transform_4(%arg0: i32) -> (i32, i32) {
    %c0_i32 = arith.constant 0 : i32
    %c0_i32_0 = arith.constant 0 : i32
    %c0_i32_1 = arith.constant 0 : i32
    return %c0_i32, %c0_i32_0 : i32, i32
  }
  func.func @transform_5(%arg0: i32) -> (i32, i32) {
    %c0_i32 = arith.constant 0 : i32
    %c0_i32_0 = arith.constant 0 : i32
    %c0_i32_1 = arith.constant 0 : i32
    return %c0_i32, %c0_i32_0 : i32, i32
  }
  func.func @transform_6(%arg0: i32) -> (i32, i32) {
    %c0_i32 = arith.constant 0 : i32
    %c0_i32_0 = arith.constant 0 : i32
    %c0_i32_1 = arith.constant 0 : i32
    return %c0_i32, %c0_i32_0 : i32, i32
  }
  func.func @transform_7(%arg0: i32) -> (i32, i32) {
    %c0_i32 = arith.constant 0 : i32
    %c0_i32_0 = arith.constant 0 : i32
    return %arg0, %c0_i32 : i32, i32
  }
}

</mosaic_0001>

<bundles_post_ra>
// kernel: tpu_custom_call.1
= control target key start
LH: loop header
LB: loop body
LE: loop exit
PB: predicated region body
PF: predicated region fallthrough
CT: control target
= control target key end

     0   :  { %12 = vsyncpa [#allocation3], 0  ;;  %s1034_s0 = inlined_call_operand.hbm [shape: f32[8,16], index: 0, kind: input, shape index: {}]   ;;  %s1035_s1 = inlined_call_operand.hbm [shape: bf16[16,256], index: 1, kind: input, shape index: {}]   ;;  %s1036_s2 = inlined_call_operand.vmem [shape: f32[1,256], index: 2, kind: input, shape index: {}]   ;;  %s1037_s3 = inlined_call_operand.hbm [shape: bf16[256,256], index: 3, kind: input, shape index: {}]   ;;  %s1038_s4 = inlined_call_operand.vmem [shape: f32[1,256], index: 4, kind: input, shape index: {}]   ;;  %s1039_s5 = inlined_call_operand.hbm [shape: bf16[256,256], index: 5, kind: input, shape index: {}]   ;;  %s1040_s6 = inlined_call_operand.vmem [shape: f32[1,256], index: 6, kind: input, shape index: {}]   ;;  %s1041_s7 = inlined_call_operand.hbm [shape: f32[8,256], index: 7, kind: output, shape index: {}]  }
   0x1   :  { %13 = vsyncpa [#allocation6], 0 }
   0x2   :  { %14 = vsyncpa [#allocation9], 0 }
   0x3   :  { %15 = vsyncpa [#allocation4], 0  ;;  %s953_s24 = smov [#allocation5]  }
   0x4   :  { %s31_s25 = sshll.u32 %s953_s24, 4  ;;  %s32_s25 = int_to_ptr.vmem [resolvable:$true] %s31_s25 }
   0x5   :  { %s853_s26 = scalar_lea.vmem %s32_s25, 256  ;;  %p858_p1 = scmp.lt.s32.totalorder %s32_s25, %s32_s25 }
   0x6   :  { %p854_p0 = scmp.ne.s32.totalorder %s32_s25, %s853_s26  ;;  %p859_p2 = scmp.lt.s32.totalorder %s853_s26, %s853_s26 }
   0x8   :  { %p860_p3 = por %p859_p2, %p858_p1 }
   0xa   :  { %p861_p4 = pnand %p860_p3, %p854_p0 }
   0xc   :  { %864 = shalt.err (!%p861_p4)
}
   0xd   :  { %s954_s27 = smov 128   ;;  %s955_s28 = smov 8  }
   0xe   :  { %37 = dma.hbm_to_vmem [thread:$0]  %s1035_s1, 256, %s32_s25, [#allocation6], %s954_s27, %s954_s27, %s955_s28  }
   0xf   :  { %s956_s8 = smov [#allocation2]   ;;  %s957_s10 = smov [#allocation7]  }
  0x10   :  { %s22_s9 = sshll.u32 %s956_s8, 4  ;;  %s45_s11 = sshll.u32 %s957_s10, 4  ;;  %s23_s9 = int_to_ptr.vmem [resolvable:$true] %s22_s9  ;;  %s46_s11 = int_to_ptr.vmem [resolvable:$true] %s45_s11 }
  0x11   :  { %s873_s12 = scalar_lea.vmem %s23_s9, 128  ;;  %p878_p6 = scmp.lt.s32.totalorder %s23_s9, %s23_s9 }
  0x12   :  { %p874_p5 = scmp.ne.s32.totalorder %s23_s9, %s873_s12  ;;  %p879_p7 = scmp.lt.s32.totalorder %s873_s12, %s873_s12 }
  0x14   :  { %p880_p8 = por %p879_p7, %p878_p6 }
  0x16   :  { %p881_p9 = pnand %p880_p8, %p874_p5 }
  0x18   :  { %884 = shalt.err (!%p881_p9)
}
  0x19   :  { %25 = dma.hbm_to_vmem [thread:$0]  %s1034_s0, 128, %s23_s9, [#allocation3]  }
  0x1a   :  { %s893_s15 = scalar_lea.vmem %s46_s11, 4096  ;;  %p898_p11 = scmp.lt.s32.totalorder %s46_s11, %s46_s11 }
  0x1b   :  { %p894_p10 = scmp.ne.s32.totalorder %s46_s11, %s893_s15  ;;  %p899_p12 = scmp.lt.s32.totalorder %s893_s15, %s893_s15 }
  0x1d   :  { %p900_p13 = por %p899_p12, %p898_p11 }
  0x1f   :  { %p901_p0 = pnand %p900_p13, %p894_p10 }
  0x21   :  { %904 = shalt.err (!%p901_p0)
}
  0x22   :  { %51 = dma.hbm_to_vmem [thread:$0]  %s1037_s3, 4096, %s46_s11, [#allocation6], %s954_s27, %s954_s27, %s955_s28  }
  0x23   :  { %s958_s17 = smov [#allocation8]  }
  0x24   :  { %s59_s18 = sshll.u32 %s958_s17, 4  ;;  %s60_s18 = int_to_ptr.vmem [resolvable:$true] %s59_s18 }
  0x25   :  { %s913_s19 = scalar_lea.vmem %s60_s18, 4096  ;;  %p918_p2 = scmp.lt.s32.totalorder %s60_s18, %s60_s18 }
  0x26   :  { %p914_p1 = scmp.ne.s32.totalorder %s60_s18, %s913_s19  ;;  %p919_p3 = scmp.lt.s32.totalorder %s913_s19, %s913_s19 }
  0x28   :  { %p920_p4 = por %p919_p3, %p918_p2 }
  0x2a   :  { %p921_p5 = pnand %p920_p4, %p914_p1 }
  0x2c   :  { %924 = shalt.err (!%p921_p5)
}
  0x2d   :  { %65 = dma.hbm_to_vmem [thread:$0]  %s1039_s5, 4096, %s60_s18, [#allocation9], %s954_s27, %s954_s27, %s955_s28  }
  0x2e   :  { %945 = dma.done.wait [#allocation3], 128  }
  0x2f   :  { %946 = vsyncadd [#allocation3], 4294967168 }
  0x30   :  { %947 = dma.done.wait [#allocation6], 4352  }
  0x31   :  { %948 = vsyncadd [#allocation6], 4294962944 }
  0x32   :  { %949 = dma.done.wait [#allocation9], 4096  }
  0x33   :  { %950 = vsyncadd [#allocation9], 4294963200  ;;  %v959_v0 = vmov 0   ;;  %v746_v1 = vld [vmem:[#allocation5 + $0x4] ss:$8 sps:$4 sm:$0xff]   ;;  %v81_v3 = vld [vmem:[#allocation2] sm:$0xff] }
  0x34   :  { %143 = vmatprep.mubr.bf16.mxu0 %v959_v0  ;;  %v748_v2 = vld [vmem:[#allocation5] ss:$8 sps:$4 sm:$0xff]   ;;  %125 = vmatprep.subr.bf16.mxu0 %v746_v1  ;;  %v82_v4 = vpack.c.bf16 %v81_v3, %v81_v3  ;;  %v749_v5 = vld [vmem:[#allocation7 + $0x74] ss:$8 sps:$4 sm:$0xff]   ;;  %vm107_vm0 = vcmask 130048   ;;  %v87_v1 = vlaneseq }
  0x35   :  { %v751_v6 = vld [vmem:[#allocation7 + $0x70] ss:$8 sps:$4 sm:$0xff]   ;;  %126 = vmatpush1.bf16.msra.mxu0 %v748_v2  ;;  %v752_v7 = vld [vmem:[#allocation7 + $0x64] ss:$8 sps:$4 sm:$0xff]   ;;  %360 = vmatprep.subr.bf16.mxu1 %v749_v5  ;;  %v754_v8 = vld [vmem:[#allocation7 + $0x60] ss:$8 sps:$4 sm:$0xff]  }
  0x36   :  { %361 = vmatpush1.bf16.msra.mxu1 %v751_v6  ;;  %v755_v9 = vld [vmem:[#allocation7 + $0x54] ss:$8 sps:$4 sm:$0xff]   ;;  %v757_v10 = vld [vmem:[#allocation7 + $0x50] ss:$8 sps:$4 sm:$0xff]   ;;  %v758_v11 = vld [vmem:[#allocation7 + $0x44] ss:$8 sps:$4 sm:$0xff]  }
  0x37   :  { %362 = vmatprep.subr.bf16.mxu1 %v752_v7  ;;  %v760_v12 = vld [vmem:[#allocation7 + $0x40] ss:$8 sps:$4 sm:$0xff]   ;;  %v761_v13 = vld [vmem:[#allocation7 + $0x34] ss:$8 sps:$4 sm:$0xff]   ;;  %v763_v14 = vld [vmem:[#allocation7 + $0x30] ss:$8 sps:$4 sm:$0xff]  }
  0x38   :  { %673 = vmatmul.mubr.msk.bf16.vlgmr.msra.gmra.mxu0 %vm107_vm0, %v82_v4  ;;  %v764_v15 = vld [vmem:[#allocation7 + $0x24] ss:$8 sps:$4 sm:$0xff]   ;;  %v766_v16 = vld [vmem:[#allocation7 + $0x20] ss:$8 sps:$4 sm:$0xff]   ;;  %v767_v17 = vld [vmem:[#allocation7 + $0x14] ss:$8 sps:$4 sm:$0xff]  }
  0x39   :  { %v769_v18 = vld [vmem:[#allocation7 + $0x10] ss:$8 sps:$4 sm:$0xff]   ;;  %v770_v19 = vld [vmem:[#allocation7 + $0x4] ss:$8 sps:$4 sm:$0xff]   ;;  %v772_v20 = vld [vmem:[#allocation7] ss:$8 sps:$4 sm:$0xff]  }
  0x3a   :  { %363 = vmatpush1.bf16.msra.mxu1 %v754_v8  ;;  %v773_v21 = vld [vmem:[#allocation7 + $0xf4] ss:$8 sps:$4 sm:$0xff]   ;;  %v775_v22 = vld [vmem:[#allocation7 + $0xf0] ss:$8 sps:$4 sm:$0xff]   ;;  %v776_v23 = vld [vmem:[#allocation7 + $0xe4] ss:$8 sps:$4 sm:$0xff]  }
  0x3b   :  { %364 = vmatprep.subr.bf16.mxu1 %v755_v9  ;;  %v778_v24 = vld [vmem:[#allocation7 + $0xe0] ss:$8 sps:$4 sm:$0xff]   ;;  %v779_v25 = vld [vmem:[#allocation7 + $0xd4] ss:$8 sps:$4 sm:$0xff]   ;;  %v781_v26 = vld [vmem:[#allocation7 + $0xd0] ss:$8 sps:$4 sm:$0xff]  }
  0x3c   :  { %v782_v27 = vld [vmem:[#allocation7 + $0xc4] ss:$8 sps:$4 sm:$0xff]   ;;  %v784_v28 = vld [vmem:[#allocation7 + $0xc0] ss:$8 sps:$4 sm:$0xff]   ;;  %v785_v29 = vld [vmem:[#allocation7 + $0xb4] ss:$8 sps:$4 sm:$0xff]  }
  0x3d   :  { %v787_v30 = vld [vmem:[#allocation7 + $0xb0] ss:$8 sps:$4 sm:$0xff]   ;;  %v788_v31 = vld [vmem:[#allocation7 + $0xa4] ss:$8 sps:$4 sm:$0xff]   ;;  %v790_v32 = vld [vmem:[#allocation7 + $0xa0] ss:$8 sps:$4 sm:$0xff]  }
  0x3e   :  { %365 = vmatpush1.bf16.msra.mxu1 %v757_v10  ;;  %v791_v33 = vld [vmem:[#allocation7 + $0x94] ss:$8 sps:$4 sm:$0xff]   ;;  %v793_v34 = vld [vmem:[#allocation7 + $0x90] ss:$8 sps:$4 sm:$0xff]   ;;  %v794_v35 = vld [vmem:[#allocation7 + $0x84] ss:$8 sps:$4 sm:$0xff]  }
  0x3f   :  { %366 = vmatprep.subr.bf16.mxu1 %v758_v11  ;;  %v796_v36 = vld [vmem:[#allocation7 + $0x80] ss:$8 sps:$4 sm:$0xff]   ;;  %v797_v37 = vld [vmem:[#allocation8 + $0x70] ss:$8 sps:$4 sm:$0xff]   ;;  %v799_v38 = vld [vmem:[#allocation8 + $0x74] ss:$8 sps:$4 sm:$0xff]  }
  0x40   :  { %v802_v39 = vld [vmem:[#allocation8 + $0x64] ss:$8 sps:$4 sm:$0xff]   ;;  %609 = vmatprep.subr.bf16.mxu0 %v799_v38  ;;  %v800_v40 = vld [vmem:[#allocation8 + $0x60] ss:$8 sps:$4 sm:$0xff]   ;;  %v805_v41 = vld [vmem:[#allocation8 + $0x54] ss:$8 sps:$4 sm:$0xff]  }
  0x41   :  { %610 = vmatpush1.bf16.msra.mxu0 %v797_v37  ;;  %v803_v42 = vld [vmem:[#allocation8 + $0x50] ss:$8 sps:$4 sm:$0xff]   ;;  %v808_v43 = vld [vmem:[#allocation8 + $0x44] ss:$8 sps:$4 sm:$0xff]   ;;  %v806_v44 = vld [vmem:[#allocation8 + $0x40] ss:$8 sps:$4 sm:$0xff]  }
  0x42   :  { %367 = vmatpush1.bf16.msra.mxu1 %v760_v12  ;;  %611 = vmatprep.subr.bf16.mxu0 %v802_v39  ;;  %v811_v45 = vld [vmem:[#allocation8 + $0x34] ss:$8 sps:$4 sm:$0xff]   ;;  %v809_v46 = vld [vmem:[#allocation8 + $0x30] ss:$8 sps:$4 sm:$0xff]   ;;  %v814_v47 = vld [vmem:[#allocation8 + $0x24] ss:$8 sps:$4 sm:$0xff]  }
  0x43   :  { %368 = vmatprep.subr.bf16.mxu1 %v761_v13  ;;  %v812_v48 = vld [vmem:[#allocation8 + $0x20] ss:$8 sps:$4 sm:$0xff]   ;;  %v817_v49 = vld [vmem:[#allocation8 + $0x14] ss:$8 sps:$4 sm:$0xff]   ;;  %v815_v50 = vld [vmem:[#allocation8 + $0x10] ss:$8 sps:$4 sm:$0xff]  }
  0x44   :  { %v820_v51 = vld [vmem:[#allocation8 + $0x4] ss:$8 sps:$4 sm:$0xff]   ;;  %v818_v52 = vld [vmem:[#allocation8] ss:$8 sps:$4 sm:$0xff]   ;;  %v823_v53 = vld [vmem:[#allocation8 + $0xf4] ss:$8 sps:$4 sm:$0xff]  }
  0x45   :  { %612 = vmatpush1.bf16.msra.mxu0 %v800_v40  ;;  %v821_v54 = vld [vmem:[#allocation8 + $0xf0] ss:$8 sps:$4 sm:$0xff]   ;;  %v826_v55 = vld [vmem:[#allocation8 + $0xe4] ss:$8 sps:$4 sm:$0xff]   ;;  %v824_v56 = vld [vmem:[#allocation8 + $0xe0] ss:$8 sps:$4 sm:$0xff]  }
  0x46   :  { %369 = vmatpush1.bf16.msra.mxu1 %v763_v14  ;;  %613 = vmatprep.subr.bf16.mxu0 %v805_v41  ;;  %v829_v57 = vld [vmem:[#allocation8 + $0xd4] ss:$8 sps:$4 sm:$0xff]   ;;  %v827_v58 = vld [vmem:[#allocation8 + $0xd0] ss:$8 sps:$4 sm:$0xff]   ;;  %v832_v59 = vld [vmem:[#allocation8 + $0xc4] ss:$8 sps:$4 sm:$0xff]  }
  0x47   :  { %370 = vmatprep.subr.bf16.mxu1 %v764_v15  ;;  %v830_v60 = vld [vmem:[#allocation8 + $0xc0] ss:$8 sps:$4 sm:$0xff]   ;;  %v835_v61 = vld [vmem:[#allocation8 + $0xb4] ss:$8 sps:$4 sm:$0xff]   ;;  %v833_v62 = vld [vmem:[#allocation8 + $0xb0] ss:$8 sps:$4 sm:$0xff]  }
  0x48   :  { %v838_v63 = vld [vmem:[#allocation8 + $0xa4] ss:$8 sps:$4 sm:$0xff]   ;;  %v836_v0 = vld [vmem:[#allocation8 + $0xa0] ss:$8 sps:$4 sm:$0xff]   ;;  %v88_v2 = vshrl.u32 %v87_v1, 7 }
  0x49   :  { %614 = vmatpush1.bf16.msra.mxu0 %v803_v42  ;;  %v85_v4 = vld [vmem:[%s1036_s2] sm:$0x3] }
  0x4a   :  { %371 = vmatpush1.bf16.msra.mxu1 %v766_v16  ;;  %615 = vmatprep.subr.bf16.mxu0 %v808_v43  ;;  %v89_v3 = vsub.s32 0, %v88_v2  ;;  %v93_v5 = vsub.s32 1, %v88_v2 }
  0x4b   :  { %372 = vmatprep.subr.bf16.mxu1 %v767_v17 }
  0x4c   :  { %v90_v6 = vrot.slane %v85_v4, %v89_v3  ;;  %v94_v7 = vrot.slane %v85_v4, %v93_v5 }
  0x4d   :  { %616 = vmatpush1.bf16.msra.mxu0 %v806_v44 }
  0x4e   :  { %373 = vmatpush1.bf16.msra.mxu1 %v769_v18  ;;  %617 = vmatprep.subr.bf16.mxu0 %v811_v45  ;;  %v841_v18 = vld [vmem:[#allocation8 + $0x94] ss:$8 sps:$4 sm:$0xff]  }
  0x4f   :  { %374 = vmatprep.subr.bf16.mxu1 %v770_v19  ;;  %v839_v19 = vld [vmem:[#allocation8 + $0x90] ss:$8 sps:$4 sm:$0xff]  }
  0x51   :  { %618 = vmatpush1.bf16.msra.mxu0 %v809_v46 }
  0x52   :  { %375 = vmatpush1.bf16.msra.mxu1 %v772_v20  ;;  %619 = vmatprep.subr.bf16.mxu0 %v814_v47  ;;  %v844_v20 = vld [vmem:[#allocation8 + $0x84] ss:$8 sps:$4 sm:$0xff]  }
  0x53   :  { %376 = vmatprep.subr.bf16.mxu1 %v773_v21  ;;  %v842_v21 = vld [vmem:[#allocation8 + $0x80] ss:$8 sps:$4 sm:$0xff]  }
  0x55   :  { %620 = vmatpush1.bf16.msra.mxu0 %v812_v48 }
  0x56   :  { %377 = vmatpush2.bf16.msra.mxu1 %v775_v22  ;;  %621 = vmatprep.subr.bf16.mxu0 %v817_v49  ;;  %v188_v22 = vld [vmem:[%s1038_s4] sm:$0x3]  ;;  %s960_s4 = smov [#allocation10]  }
  0x57   :  { %378 = vmatprep.subr.bf16.mxu1 %v776_v23  ;;  %v193_v23 = vrot.slane %v188_v22, %v89_v3  ;;  %s660_s24 = sshll.u32 %s960_s4, 4  ;;  %s661_s24 = int_to_ptr.vmem [resolvable:$true] %s660_s24 }
  0x58   :  { %s925_s25 = scalar_lea.vmem %s661_s24, 256  ;;  %p930_p7 = scmp.lt.s32.totalorder %s661_s24, %s661_s24 }
  0x59   :  { %622 = vmatpush1.bf16.msra.mxu0 %v815_v50  ;;  %p926_p6 = scmp.ne.s32.totalorder %s661_s24, %s925_s25  ;;  %p931_p8 = scmp.lt.s32.totalorder %s925_s25, %s925_s25 }
  0x5a   :  { %379 = vmatpush2.bf16.msra.mxu1 %v778_v24  ;;  %623 = vmatprep.subr.bf16.mxu0 %v820_v51  ;;  %v197_v24 = vrot.slane %v188_v22, %v93_v5 }
  0x5b   :  { %380 = vmatprep.subr.bf16.mxu1 %v779_v25  ;;  %p932_p9 = por %p931_p8, %p930_p7 }
  0x5d   :  { %624 = vmatpush1.bf16.msra.mxu0 %v818_v52  ;;  %p933_p10 = pnand %p932_p9, %p926_p6 }
  0x5e   :  { %381 = vmatpush2.bf16.msra.mxu1 %v781_v26  ;;  %625 = vmatprep.subr.bf16.mxu0 %v823_v53 }
  0x5f   :  { %382 = vmatprep.subr.bf16.mxu1 %v782_v27 }
  0x61   :  { %626 = vmatpush2.bf16.msra.mxu0 %v821_v54 }
  0x62   :  { %383 = vmatpush2.bf16.msra.mxu1 %v784_v28  ;;  %627 = vmatprep.subr.bf16.mxu0 %v826_v55 }
  0x63   :  { %384 = vmatprep.subr.bf16.mxu1 %v785_v29 }
  0x65   :  { %628 = vmatpush2.bf16.msra.mxu0 %v824_v56 }
  0x66   :  { %385 = vmatpush2.bf16.msra.mxu1 %v787_v30  ;;  %629 = vmatprep.subr.bf16.mxu0 %v829_v57 }
  0x67   :  { %386 = vmatprep.subr.bf16.mxu1 %v788_v31 }
  0x69   :  { %630 = vmatpush2.bf16.msra.mxu0 %v827_v58 }
  0x6a   :  { %387 = vmatpush2.bf16.msra.mxu1 %v790_v32  ;;  %631 = vmatprep.subr.bf16.mxu0 %v832_v59 }
  0x6b   :  { %388 = vmatprep.subr.bf16.mxu1 %v791_v33 }
  0x6d   :  { %632 = vmatpush2.bf16.msra.mxu0 %v830_v60 }
  0x6e   :  { %389 = vmatpush2.bf16.msra.mxu1 %v793_v34  ;;  %633 = vmatprep.subr.bf16.mxu0 %v835_v61 }
  0x6f   :  { %390 = vmatprep.subr.bf16.mxu1 %v794_v35  ;;  %v437_v35 = vld [vmem:[%s1040_s6] sm:$0x3] }
  0x70   :  { %v446_v37 = vrot.slane %v437_v35, %v93_v5 }
  0x71   :  { %634 = vmatpush2.bf16.msra.mxu0 %v833_v62 }
  0x72   :  { %391 = vmatpush2.bf16.msra.mxu1 %v796_v36  ;;  %635 = vmatprep.subr.bf16.mxu0 %v838_v63  ;;  %v442_v36 = vrot.slane %v437_v35, %v89_v3 }
  0x75   :  { %636 = vmatpush2.bf16.msra.mxu0 %v836_v0 }
  0x76   :  { %637 = vmatprep.subr.bf16.mxu0 %v841_v18 }
  0x79   :  { %638 = vmatpush2.bf16.msra.mxu0 %v839_v19 }
  0x7a   :  { %639 = vmatprep.subr.bf16.mxu0 %v844_v20 }
  0x7d   :  { %640 = vmatpush2.bf16.msra.mxu0 %v842_v21 }
  0xf8   :  { %v145_v8 = vpop.f32.mrf.mxu0 }
  0xf9   :  { %v146_v9 = vadd.f32 %v145_v8, %v90_v6 }
  0xfa   :  { %v147_v10 = vpop.f32.mrf.mxu0 }
  0xfb   :  { %v148_v11 = vadd.f32 %v147_v10, %v94_v7  ;;  %v152_v12 = vmax.f32 %v146_v9, 0.0 }
  0xfc   :  { %v149_v13 = vpop.f32.mrf.mxu0 }
  0xfd   :  { %v153_v14 = vmax.f32 %v148_v11, 0.0  ;;  %v154_v17 = vpack.c.bf16 %v152_v12, %v152_v12 }
  0xfe   :  { %v150_v15 = vpop.f32.mrf.mxu0 }
  0xff   :  { %v155_v16 = vpack.c.bf16 %v153_v14, %v153_v14 }
 0x101   :  { %392 = vmatprep.mubr.bf16.mxu1 %v155_v16 }
 0x102   :  { %393 = vmatmul.mubr.bf16.vlgmr.msra.gmra.mxu1 %v154_v17 }
 0x1c2   :  { %v394_v25 = vpop.f32.mrf.mxu1 }
 0x1c3   :  { %v395_v26 = vadd.f32 %v394_v25, %v193_v23 }
 0x1c4   :  { %v396_v27 = vpop.f32.mrf.mxu1 }
 0x1c5   :  { %v397_v28 = vadd.f32 %v396_v27, %v197_v24  ;;  %v401_v29 = vmax.f32 %v395_v26, 0.0 }
 0x1c6   :  { %v398_v30 = vpop.f32.mrf.mxu1 }
 0x1c7   :  { %v402_v31 = vmax.f32 %v397_v28, 0.0  ;;  %v403_v34 = vpack.c.bf16 %v401_v29, %v401_v29 }
 0x1c8   :  { %v399_v32 = vpop.f32.mrf.mxu1 }
 0x1c9   :  { %v404_v33 = vpack.c.bf16 %v402_v31, %v402_v31 }
 0x1cb   :  { %641 = vmatprep.mubr.bf16.mxu0 %v404_v33 }
 0x1cc   :  { %642 = vmatmul.mubr.bf16.vlgmr.msra.gmra.mxu0 %v403_v34 }
 0x28c   :  { %v643_v38 = vpop.f32.mrf.mxu0 }
 0x28d   :  { %v644_v39 = vadd.f32 %v643_v38, %v442_v36 }
 0x28e   :  { %v645_v40 = vpop.f32.mrf.mxu0 }
 0x28f   :  { %v650_v41 = vmax.f32 %v644_v39, 0.0  ;;  %v646_v42 = vadd.f32 %v645_v40, %v446_v37 }
 0x290   :  { %v647_v43 = vpop.f32.mrf.mxu0 }
 0x291   :  { %652 = vst [vmem:[#allocation10] sm:$0xff] %v650_v41  ;;  %v651_v44 = vmax.f32 %v646_v42, 0.0 }
 0x292   :  { %v648_v45 = vpop.f32.mrf.mxu0 }
 0x293   :  { %653 = vst [vmem:[#allocation10 + $0x8] sm:$0xff] %v651_v44 }
 0x294   :  { %936 = shalt.err (!%p933_p10)
}
 0x295   :  { %663 = dma.vmem_to_hbm [thread:$0]  %s661_s24, 256, %s1041_s7, [#allocation4]  }
 0x296   :  { %951 = dma.done.wait [#allocation4], 256  }
 0x297   :  { %952 = vsyncadd [#allocation4], 4294967040 }
 0x298   :  { %667 = vsyncpa [#allocation3], 1 }
 0x299   :  { %668 = vsyncpa [#allocation6], 1 }
 0x29a   :  { %669 = vsyncpa [#allocation9], 1 }
 0x29b   :  { %670 = vsyncpa [#allocation4], 1 }

</bundles_post_ra>
